<compile_context>
chip_gen: v5e
topology: v5e:2x2
jax: 0.10.0
libtpu: 0.0.40
codegen_flags: <defaults>
</compile_context>

<pallas_src>
import functools

import jax
import jax.numpy as jnp
from jax.experimental import pallas as pl
from jax.experimental.pallas import tpu as pltpu


def _round_up(v, m):
    return ((v + m - 1) // m) * m


def _linear_relu_kernel(x_ref, w_ref, b_ref, o_ref, acc_ref, *, compute_dtype):
    # x_ref: (tm, tk) tile of inputs
    # w_ref: (tn, tk) tile of weight in PyTorch (out_features, in_features) layout
    # b_ref: (1, tn)  tile of bias
    # o_ref: (tm, tn) output tile
    # acc_ref: (tm, tn) f32 accumulator, resident across the K grid axis
    k = pl.program_id(2)

    @pl.when(k == 0)
    def _():
        acc_ref[...] = jnp.zeros_like(acc_ref)

    x = x_ref[...]
    w = w_ref[...]
    if compute_dtype is not None:
        x = x.astype(compute_dtype)
        w = w.astype(compute_dtype)

    # Contract x (tm, tk) with w (tn, tk) over K -> (tm, tn).
    # This is x @ W.T without materializing a transposed weight in HBM.
    acc_ref[...] += jax.lax.dot_general(
        x, w,
        dimension_numbers=(((1,), (1,)), ((), ())),
        preferred_element_type=jnp.float32)

    @pl.when(k == pl.num_programs(2) - 1)
    def _():
        y = acc_ref[...] + b_ref[...].astype(jnp.float32)  # bias broadcast over rows
        o_ref[...] = jnp.maximum(y, 0.0).astype(o_ref.dtype)


def linear_with_standout_forward(x, weight, bias, *, tm=512, tn=256, tk=512,
                                 compute_dtype=None):
    """Eval-mode forward of LinearWithStandout: ReLU(x @ weight.T + bias).

    x:      (batch, input_dim)       float32
    weight: (hidden_dim, input_dim)  PyTorch nn.Linear layout (never transposed here)
    bias:   (hidden_dim,)
    compute_dtype: optional (e.g. jnp.bfloat16) to run the MXU matmul in a
                   narrower dtype with f32 accumulation.
    """
    batch, input_dim = x.shape
    hidden_dim, k_dim = weight.shape
    assert k_dim == input_dim
    assert bias.shape == (hidden_dim,)

    # Hardware-friendly padded extents: f32 sublane = 8, lane = 128.
    m_pad = _round_up(batch, 8)
    n_pad = _round_up(hidden_dim, 128)   # lane-dense output stores
    k_pad = _round_up(input_dim, 128)

    # Clamp tiles to the (padded) problem, then make padded dims tile-divisible.
    tm = min(tm, m_pad)
    tn = min(tn, n_pad)
    tk = min(tk, k_pad)
    m_pad = _round_up(m_pad, tm)
    n_pad = _round_up(n_pad, tn)
    k_pad = _round_up(k_pad, tk)

    # Zero-padding is a no-op when shapes are already aligned (common for real
    # model dims), so nothing extra moves through HBM in that case.
    if (m_pad, k_pad) != (batch, input_dim):
        x = jnp.pad(x, ((0, m_pad - batch), (0, k_pad - input_dim)))
    if (n_pad, k_pad) != (hidden_dim, input_dim):
        weight = jnp.pad(weight, ((0, n_pad - hidden_dim), (0, k_pad - input_dim)))
    if n_pad != hidden_dim:
        bias = jnp.pad(bias, (0, n_pad - hidden_dim))
    b2d = bias.reshape(1, n_pad)

    grid = (m_pad // tm, n_pad // tn, k_pad // tk)
    kernel = functools.partial(_linear_relu_kernel, compute_dtype=compute_dtype)

    out_padded = pl.pallas_call(
        kernel,
        out_shape=jax.ShapeDtypeStruct((m_pad, n_pad), x.dtype),
        grid_spec=pltpu.PrefetchScalarGridSpec(
            num_scalar_prefetch=0,
            grid=grid,
            in_specs=[
                # x tile: rows i, K-chunk k
                pl.BlockSpec((tm, tk), lambda i, j, k: (i, k)),
                # weight tile in (out_features, in_features) layout: N-chunk j, K-chunk k
                pl.BlockSpec((tn, tk), lambda i, j, k: (j, k)),
                # bias tile: N-chunk j
                pl.BlockSpec((1, tn), lambda i, j, k: (0, j)),
            ],
            out_specs=pl.BlockSpec((tm, tn), lambda i, j, k: (i, j)),
            scratch_shapes=[pltpu.VMEM((tm, tn), jnp.float32)],
        ),
        compiler_params=pltpu.CompilerParams(
            dimension_semantics=("parallel", "parallel", "arbitrary"),
            vmem_limit_bytes=64 * 1024 * 1024,
        ),
    )(x, weight, b2d)

    # Strip padding back to the logical shape.
    return out_padded[:batch, :hidden_dim]


if __name__ == "__main__":
    key = jax.random.PRNGKey(0)
    k_x, k_w, k_b = jax.random.split(key, 3)

    batch, input_dim, hidden_dim = 16, 32, 32

    # Deterministic parameter init mimicking nn.Linear default:
    # U(-1/sqrt(input_dim), 1/sqrt(input_dim))
    bound = 1.0 / jnp.sqrt(jnp.float32(input_dim))
    weight = jax.random.uniform(k_w, (hidden_dim, input_dim),
                                minval=-bound, maxval=bound,
                                dtype=jnp.float32)
    bias = jax.random.uniform(k_b, (hidden_dim,),
                              minval=-bound, maxval=bound,
                              dtype=jnp.float32)
    x = jax.random.normal(k_x, (batch, input_dim), dtype=jnp.float32)

    out = linear_with_standout_forward(x, weight, bias)
    out = jax.block_until_ready(out)

    # Reference check in plain JAX.
    ref = jnp.maximum(x @ weight.T + bias, 0.0)
    assert out.shape == (batch, hidden_dim)
    assert jnp.allclose(out, ref, atol=1e-5, rtol=1e-5)

    print("KERNEL_OK")
</pallas_src>

<mosaic_0001>
module attributes {stable_mosaic.version = 11 : i64} {
  func.func @_linear_relu_kernel(%arg0: i32, %arg1: i32, %arg2: i32, %arg3: memref<16x128xf32, #tpu.memory_space<vmem>>, %arg4: memref<128x128xf32, #tpu.memory_space<vmem>>, %arg5: memref<1x128xf32, #tpu.memory_space<vmem>>, %arg6: memref<16x128xf32, #tpu.memory_space<vmem>>, %arg7: memref<16x128xf32, #tpu.memory_space<vmem>>) attributes {dimension_semantics = [#tpu.dimension_semantics<parallel>, #tpu.dimension_semantics<parallel>, #tpu.dimension_semantics<arbitrary>], iteration_bounds = array<i64: 1, 1, 1>, scalar_prefetch = 0 : i64, scratch_operands = 1 : i64, tpu.core_type = #tpu.core_type<tc>, window_params = [{transform_indices = @transform_0, window_bounds = array<i64: 16, 128>}, {transform_indices = @transform_1, window_bounds = array<i64: 128, 128>}, {transform_indices = @transform_2, window_bounds = array<i64: 1, 128>}, {transform_indices = @transform_3, window_bounds = array<i64: 16, 128>}]} {
    %c0_i32 = arith.constant 0 : i32
    %0 = arith.cmpi eq, %arg2, %c0_i32 : i32
    %1 = arith.extui %0 : i1 to i32
    %c0_i32_0 = arith.constant 0 : i32
    %2 = arith.cmpi ne, %1, %c0_i32_0 : i32
    scf.if %2 {
      %cst_10 = arith.constant 0.000000e+00 : f32
      %12 = vector.broadcast %cst_10 : f32 to vector<16x128xf32>
      %c0_11 = arith.constant 0 : index
      %c0_12 = arith.constant 0 : index
      %13 = vector.load %arg7[%c0_11, %c0_12] : memref<16x128xf32, #tpu.memory_space<vmem>>, vector<16x128xf32>
      tpu.vector_store %arg7[%c0_11, %c0_12], %12 {strides = array<i32>} : memref<16x128xf32, #tpu.memory_space<vmem>>, vector<16x128xf32>,
    } else {
    }
    %c0 = arith.constant 0 : index
    %c0_1 = arith.constant 0 : index
    %3 = vector.load %arg3[%c0, %c0_1] : memref<16x128xf32, #tpu.memory_space<vmem>>, vector<16x128xf32>
    %c0_2 = arith.constant 0 : index
    %c0_3 = arith.constant 0 : index
    %4 = vector.load %arg4[%c0_2, %c0_3] : memref<128x128xf32, #tpu.memory_space<vmem>>, vector<128x128xf32>
    %c0_4 = arith.constant 0 : index
    %c0_5 = arith.constant 0 : index
    %5 = vector.load %arg7[%c0_4, %c0_5] : memref<16x128xf32, #tpu.memory_space<vmem>>, vector<16x128xf32>
    %cst = arith.constant dense<0.000000e+00> : vector<16x128xf32>
    %6 = tpu.matmul %3, %4, %cst {dimension_numbers = #tpu.dot_dimension_numbers<[1], [1], [0], [0], [0, 0, 1, 0], [], []>} : vector<16x128xf32>, vector<128x128xf32>, vector<16x128xf32> -> vector<16x128xf32>
    %7 = arith.addf %5, %6 : vector<16x128xf32>
    %c0_6 = arith.constant 0 : index
    %c0_7 = arith.constant 0 : index
    %8 = vector.load %arg7[%c0_6, %c0_7] : memref<16x128xf32, #tpu.memory_space<vmem>>, vector<16x128xf32>
    tpu.vector_store %arg7[%c0_6, %c0_7], %7 {strides = array<i32>} : memref<16x128xf32, #tpu.memory_space<vmem>>, vector<16x128xf32>,
    %c0_i32_8 = arith.constant 0 : i32
    %9 = arith.cmpi eq, %arg2, %c0_i32_8 : i32
    %10 = arith.extui %9 : i1 to i32
    %c0_i32_9 = arith.constant 0 : i32
    %11 = arith.cmpi ne, %10, %c0_i32_9 : i32
    scf.if %11 {
      %c0_10 = arith.constant 0 : index
      %c0_11 = arith.constant 0 : index
      %12 = vector.load %arg7[%c0_10, %c0_11] : memref<16x128xf32, #tpu.memory_space<vmem>>, vector<16x128xf32>
      %c0_12 = arith.constant 0 : index
      %c0_13 = arith.constant 0 : index
      %13 = vector.load %arg5[%c0_12, %c0_13] : memref<1x128xf32, #tpu.memory_space<vmem>>, vector<1x128xf32>
      %14 = vector.broadcast %13 : vector<1x128xf32> to vector<16x128xf32>
      %15 = arith.addf %12, %14 : vector<16x128xf32>
      %cst_14 = arith.constant 0.000000e+00 : f32
      %16 = vector.broadcast %cst_14 : f32 to vector<16x128xf32>
      %17 = arith.maximumf %15, %16 : vector<16x128xf32>
      %c0_15 = arith.constant 0 : index
      %c0_16 = arith.constant 0 : index
      %18 = vector.load %arg6[%c0_15, %c0_16] : memref<16x128xf32, #tpu.memory_space<vmem>>, vector<16x128xf32>
      tpu.vector_store %arg6[%c0_15, %c0_16], %17 {strides = array<i32>} : memref<16x128xf32, #tpu.memory_space<vmem>>, vector<16x128xf32>,
    } else {
    }
    return
  }
  func.func @transform_0(%arg0: i32, %arg1: i32, %arg2: i32) -> (i32, i32) {
    %c0_i32 = arith.constant 0 : i32
    return %arg0, %arg2 : i32, i32
  }
  func.func @transform_1(%arg0: i32, %arg1: i32, %arg2: i32) -> (i32, i32) {
    %c0_i32 = arith.constant 0 : i32
    return %arg1, %arg2 : i32, i32
  }
  func.func @transform_2(%arg0: i32, %arg1: i32, %arg2: i32) -> (i32, i32) {
    %c0_i32 = arith.constant 0 : i32
    %c0_i32_0 = arith.constant 0 : i32
    return %c0_i32, %arg1 : i32, i32
  }
  func.func @transform_3(%arg0: i32, %arg1: i32, %arg2: i32) -> (i32, i32) {
    %c0_i32 = arith.constant 0 : i32
    return %arg0, %arg1 : i32, i32
  }
}

</mosaic_0001>

<bundles_post_ra>
// kernel: tpu_custom_call.1
= control target key start
LH: loop header
LB: loop body
LE: loop exit
PB: predicated region body
PF: predicated region fallthrough
CT: control target
= control target key end

     0   :  { %8 = vsyncpa [#allocation4], 0  ;;  %s281_s0 = inlined_call_operand.hbm [shape: f32[16,128], index: 0, kind: input, shape index: {}]   ;;  %s282_s1 = inlined_call_operand.hbm [shape: f32[128,128], index: 1, kind: input, shape index: {}]   ;;  %s283_s2 = inlined_call_operand.vmem [shape: f32[1,128], index: 2, kind: input, shape index: {}]   ;;  %s284_s3 = inlined_call_operand.hbm [shape: f32[16,128], index: 3, kind: output, shape index: {}]  }
   0x1   :  { %9 = vsyncpa [#allocation7], 0 }
   0x2   :  { %10 = vsyncpa [#allocation5], 0  ;;  %s15_s14 = sshll.u32 %s281_s0, 4  ;;  %s235_s15 = smov [#allocation3]   ;;  %s16_s14 = int_to_ptr.hbm [resolvable:$true] %s15_s14 }
   0x3   :  { %s17_s16 = sshll.u32 %s235_s15, 4  ;;  %s28_s19 = sshll.u32 %s282_s1, 4  ;;  %s18_s16 = int_to_ptr.vmem [resolvable:$true] %s17_s16  ;;  %s29_s19 = int_to_ptr.hbm [resolvable:$true] %s28_s19 }
   0x4   :  { %s236_s20 = smov 128   ;;  %s237_s21 = smov 8  }
   0x5   :  { %23 = dma.hbm_to_vmem [thread:$0]  %s16_s14, 256, %s18_s16, [#allocation4], %s236_s20, %s236_s20, %s237_s21  }
   0x6   :  { %s238_s22 = smov [#allocation6]  }
   0x7   :  { %s30_s23 = sshll.u32 %s238_s22, 4  ;;  %s31_s23 = int_to_ptr.vmem [resolvable:$true] %s30_s23 }
   0x8   :  { %36 = dma.hbm_to_vmem [thread:$0]  %s29_s19, 2048, %s31_s23, [#allocation7], %s236_s20, %s236_s20, %s237_s21  }
   0x9   :  { %229 = dma.done.wait [#allocation4], 256  }
   0xa   :  { %230 = vsyncadd [#allocation4], 4294967040 }
   0xb   :  { %231 = dma.done.wait [#allocation7], 2048  }
   0xc   :  { %232 = vsyncadd [#allocation7], 4294965248  ;;  %v70_v0 = vld [vmem:[#allocation6 + $0x78] sm:$0xff]  ;;  %v69_v1 = vld [vmem:[#allocation6 + $0x70] sm:$0xff]  ;;  %s239_s24 = smov [#allocation8]   ;;  %s121_s28 = sshll.u32 %s284_s3, 4  ;;  %s122_s28 = int_to_ptr.hbm [resolvable:$true] %s121_s28 }
   0xd   :  { %73 = vmatpush.xpose.msra.mxu0 %v70_v0  ;;  %135 = vmatpush.xpose.msra.mxu1 %v70_v0  ;;  %v68_v2 = vld [vmem:[#allocation6 + $0x68] sm:$0xff]  ;;  %v67_v3 = vld [vmem:[#allocation6 + $0x60] sm:$0xff]  ;;  %v66_v4 = vld [vmem:[#allocation6 + $0x58] sm:$0xff]  ;;  %s119_s25 = sshll.u32 %s239_s24, 4  ;;  %s120_s25 = int_to_ptr.vmem [resolvable:$true] %s119_s25 }
   0xe   :  { %v65_v5 = vld [vmem:[#allocation6 + $0x50] sm:$0xff]  ;;  %v64_v6 = vld [vmem:[#allocation6 + $0x48] sm:$0xff]  ;;  %v63_v7 = vld [vmem:[#allocation6 + $0x40] sm:$0xff] }
   0xf   :  { %v62_v8 = vld [vmem:[#allocation6 + $0x38] sm:$0xff]  ;;  %v61_v9 = vld [vmem:[#allocation6 + $0x30] sm:$0xff]  ;;  %v60_v10 = vld [vmem:[#allocation6 + $0x28] sm:$0xff] }
  0x10   :  { %v59_v11 = vld [vmem:[#allocation6 + $0x20] sm:$0xff]  ;;  %v58_v12 = vld [vmem:[#allocation6 + $0x18] sm:$0xff]  ;;  %v57_v13 = vld [vmem:[#allocation6 + $0x10] sm:$0xff] }
  0x11   :  { %74 = vmatpush.xpose.msra.mxu0 %v69_v1  ;;  %136 = vmatpush.xpose.msra.mxu1 %v69_v1  ;;  %v56_v14 = vld [vmem:[#allocation6 + $0x8] sm:$0xff]  ;;  %v55_v15 = vld [vmem:[#allocation6] sm:$0xff]  ;;  %v53_v16 = vld [vmem:[#allocation3] sm:$0xff] }
  0x12   :  { %v54_v17 = vld [vmem:[#allocation3 + $0x8] sm:$0xff]  ;;  %v156_v18 = vld [vmem:[%s283_s2] ss:$0 sm:$0xff] }
  0x15   :  { %75 = vmatpush.xpose.msra.mxu0 %v68_v2  ;;  %137 = vmatpush.xpose.msra.mxu1 %v68_v2 }
  0x19   :  { %76 = vmatpush.xpose.msra.mxu0 %v67_v3  ;;  %138 = vmatpush.xpose.msra.mxu1 %v67_v3 }
  0x1d   :  { %77 = vmatpush.xpose.msra.mxu0 %v66_v4  ;;  %139 = vmatpush.xpose.msra.mxu1 %v66_v4 }
  0x21   :  { %78 = vmatpush.xpose.msra.mxu0 %v65_v5  ;;  %140 = vmatpush.xpose.msra.mxu1 %v65_v5 }
  0x25   :  { %79 = vmatpush.xpose.msra.mxu0 %v64_v6  ;;  %141 = vmatpush.xpose.msra.mxu1 %v64_v6 }
  0x29   :  { %80 = vmatpush.xpose.msra.mxu0 %v63_v7  ;;  %142 = vmatpush.xpose.msra.mxu1 %v63_v7 }
  0x2d   :  { %81 = vmatpush.xpose.msra.mxu0 %v62_v8  ;;  %143 = vmatpush.xpose.msra.mxu1 %v62_v8 }
  0x31   :  { %82 = vmatpush.xpose.msra.mxu0 %v61_v9  ;;  %144 = vmatpush.xpose.msra.mxu1 %v61_v9 }
  0x35   :  { %83 = vmatpush.xpose.msra.mxu0 %v60_v10  ;;  %145 = vmatpush.xpose.msra.mxu1 %v60_v10 }
  0x39   :  { %84 = vmatpush.xpose.msra.mxu0 %v59_v11  ;;  %146 = vmatpush.xpose.msra.mxu1 %v59_v11 }
  0x3d   :  { %85 = vmatpush.xpose.msra.mxu0 %v58_v12  ;;  %147 = vmatpush.xpose.msra.mxu1 %v58_v12 }
  0x41   :  { %86 = vmatpush.xpose.msra.mxu0 %v57_v13  ;;  %148 = vmatpush.xpose.msra.mxu1 %v57_v13 }
  0x45   :  { %87 = vmatpush.xpose.msra.mxu0 %v56_v14  ;;  %149 = vmatpush.xpose.msra.mxu1 %v56_v14 }
  0x49   :  { %88 = vmatpush.xpose.msra.mxu0 %v55_v15  ;;  %150 = vmatpush.xpose.msra.mxu1 %v55_v15 }
  0x4c   :  { %89 = vmatmul.f32.vlgmr.msra.gmra.mxu0 %v53_v16  ;;  %92 = vmatmul.f32.vlgmr.msra.gmra.mxu1 %v54_v17 }
  0xc9   :  { %v90_v19 = vpop.f32.mrf.mxu0  ;;  %v93_v20 = vpop.f32.mrf.mxu1 }
  0xca   :  { %v109_v21 = vadd.f32 %v156_v18, %v90_v19  ;;  %v110_v22 = vadd.f32 %v156_v18, %v93_v20 }
  0xcc   :  { %v111_v23 = vmax.f32 %v109_v21, 0.0  ;;  %v112_v24 = vmax.f32 %v110_v22, 0.0 }
  0xce   :  { %113 = vst [vmem:[#allocation8] sm:$0xff] %v111_v23 }
  0xcf   :  { %114 = vst [vmem:[#allocation8 + $0x8] sm:$0xff] %v112_v24 }
  0xd0   :  { %127 = dma.vmem_to_hbm [thread:$0]  %s120_s25, 256, %s122_s28, [#allocation5], %s236_s20, %s236_s20, %s237_s21  }
  0xd1   :  { %233 = dma.done.wait [#allocation5], 256  }
  0xd2   :  { %234 = vsyncadd [#allocation5], 4294967040 }
  0xd3   :  { %132 = vsyncpa [#allocation4], 1 }
  0xd4   :  { %133 = vsyncpa [#allocation7], 1 }
  0xd5   :  { %134 = vsyncpa [#allocation5], 1 }

</bundles_post_ra>
